<compile_context>
chip_gen: v5e
topology: v5e:2x2
jax: 0.10.0
libtpu: 0.0.40
codegen_flags: <defaults>
</compile_context>

<pallas_src>
import functools

import jax
import jax.numpy as jnp
from jax.experimental import pallas as pl
from jax.experimental.pallas import tpu as pltpu


HIDDEN = 150  # logical hidden size of the PyTorch module


def _round_up(x, m):
    return ((x + m - 1) // m) * m


def _softplus(x):
    # softplus(x) = max(x, 0) + log1p(exp(-|x|)); stable, 2 EUP ops,
    # matches PyTorch F.softplus (threshold=20) to ~exp(-20).
    return jnp.maximum(x, 0.0) + jnp.log1p(jnp.exp(-jnp.abs(x)))


# ---------------------------------------------------------------------------
# Kernel
# ---------------------------------------------------------------------------
def _beta_policy_kernel(state_ref, w_ref, wh_ref, b_ref, out_ref, *,
                        obs_pad, hidden_pad, out_pad):
    # state tile: (BT, obs_pad); cast to bf16 for the MXU (no-op if already bf16)
    x = state_ref[...].astype(jnp.bfloat16)

    # layer 1: (BT, obs_pad) @ (obs_pad, H) -> tanh
    w1 = w_ref[:obs_pad, :]
    h1 = jnp.dot(x, w1, preferred_element_type=jnp.float32)
    h1 = jnp.tanh(h1 + b_ref[0:1, :hidden_pad])

    # layer 2: (BT, H) @ (H, H) -> tanh
    w2 = w_ref[obs_pad:, :]
    h2 = jnp.dot(h1.astype(jnp.bfloat16), w2, preferred_element_type=jnp.float32)
    h2 = jnp.tanh(h2 + b_ref[1:2, :hidden_pad])

    # fused alpha|beta head, native (K, N) layout: (BT, H) @ (H, out_pad)
    z = jnp.dot(h2.astype(jnp.bfloat16), wh_ref[...],
                preferred_element_type=jnp.float32)
    z = z + b_ref[2:3, :out_pad]

    # lane-dense (BT, out_pad) store; wrapper slices the real 2A columns.
    out_ref[...] = (_softplus(z) + 1.0).astype(out_ref.dtype)


# ---------------------------------------------------------------------------
# Wrapper
# ---------------------------------------------------------------------------
def beta_policy_forward(state, packed):
    """state: (B, obs_space) f32 or bf16. packed: output of pack_params()."""
    B, obs = state.shape
    obs_pad = packed["obs_pad"]
    hidden_pad = packed["hidden_pad"]
    out_pad = packed["out_pad"]
    A = packed["action_space"]

    # feature-dim pad only if the observation width is not 16-aligned
    # (no-op copy avoided in the common case).
    if obs_pad != obs:
        state = jnp.pad(state, ((0, 0), (0, obs_pad - obs)))

    # Batch tiling: single tile for small B; 256-row tiles for rollout-scale
    # batches (>= 2 grid steps -> both v7x TCs busy; ~0.35us/step amortized).
    # No batch padding: pl.cdiv grid + partial last block (OOB rows masked).
    if B <= 256:
        BT = _round_up(B, 8)
    else:
        BT = 256
    nb = pl.cdiv(B, BT)

    w_slab = packed["w_slab"]
    wh = packed["wh"]
    b_slab = packed["b_slab"]

    kernel = functools.partial(
        _beta_policy_kernel,
        obs_pad=obs_pad, hidden_pad=hidden_pad, out_pad=out_pad)

    out = pl.pallas_call(
        kernel,
        out_shape=jax.ShapeDtypeStruct((B, out_pad), jnp.float32),
        grid=(nb,),
        in_specs=[
            pl.BlockSpec((BT, obs_pad), lambda i: (i, 0)),      # state tile
            pl.BlockSpec(w_slab.shape, lambda i: (0, 0)),       # w1|w2 resident
            pl.BlockSpec(wh.shape, lambda i: (0, 0)),           # head resident
            pl.BlockSpec(b_slab.shape, lambda i: (0, 0)),       # biases resident
        ],
        out_specs=pl.BlockSpec((BT, out_pad), lambda i: (i, 0)),
        compiler_params=pltpu.CompilerParams(
            dimension_semantics=("parallel",)),                 # v7x: 2 TCs
    )(state, w_slab, wh, b_slab)

    alpha = out[:, :A]
    beta = out[:, A:2 * A]
    return alpha, beta


# ---------------------------------------------------------------------------
# Params: raw (PyTorch-equivalent, f32, (in,out) layout) + packed (kernel)
# ---------------------------------------------------------------------------
def init_raw_params(key, obs_space, action_space, hidden=HIDDEN):
    """Deterministic synthetic params. Weights stored as (in, out)."""
    ks = jax.random.split(key, 8)

    def lin(kw, kb, fan_in, fan_out):
        bound = 1.0 / jnp.sqrt(fan_in)
        w = jax.random.uniform(kw, (fan_in, fan_out), jnp.float32, -bound, bound)
        b = jax.random.uniform(kb, (1, fan_out), jnp.float32, -bound, bound)
        return w, b

    w1, b1 = lin(ks[0], ks[1], obs_space, hidden)
    w2, b2 = lin(ks[2], ks[3], hidden, hidden)
    wa, ba = lin(ks[4], ks[5], hidden, action_space)
    wb, bb = lin(ks[6], ks[7], hidden, action_space)
    return dict(w1=w1, b1=b1, w2=w2, b2=b2, wa=wa, ba=ba, wb=wb, bb=bb)


def pack_params(raw, obs_space, action_space, hidden=HIDDEN):
    """One-time packing: pad, fuse heads, cast weights to bf16, build slabs."""
    H = _round_up(hidden, 128)            # 150 -> 256 (lane aligned), zero pad
    obs_pad = _round_up(obs_space, 16)    # bf16 sublane-pair aligned row offset
    a2 = 2 * action_space
    out_pad = _round_up(a2, 128)          # lane-dense head output columns

    def pad2(x, rows, cols):
        return jnp.pad(x, ((0, rows - x.shape[0]), (0, cols - x.shape[1])))

    # body slab: [w1 | w2] rows, H columns
    w1 = pad2(raw["w1"], obs_pad, H)                              # (obs_pad, H)
    w2 = pad2(raw["w2"], H, H)                                    # (H, H)
    w_slab = jnp.concatenate([w1, w2], axis=0).astype(jnp.bfloat16)

    # fused alpha|beta head in native (K, N) layout, zero-padded to 128 lanes
    wh = jnp.concatenate([raw["wa"], raw["wb"]], axis=1)          # (hidden, 2A)
    wh = pad2(wh, H, out_pad).astype(jnp.bfloat16)                # (H, out_pad)

    bias_cols = max(H, out_pad)
    b_slab = jnp.zeros((8, bias_cols), jnp.float32)
    b_slab = b_slab.at[0, :hidden].set(raw["b1"][0])
    b_slab = b_slab.at[1, :hidden].set(raw["b2"][0])
    bh = jnp.concatenate([raw["ba"], raw["bb"]], axis=1)[0]       # (2A,)
    b_slab = b_slab.at[2, :a2].set(bh)

    return dict(w_slab=w_slab, wh=wh, b_slab=b_slab,
                obs_pad=obs_pad, hidden_pad=H, out_pad=out_pad,
                action_space=action_space)


# ---------------------------------------------------------------------------
# References
# ---------------------------------------------------------------------------
def _reference_f32(state, p):
    a = jnp.tanh(state @ p["w1"] + p["b1"])
    a = jnp.tanh(a @ p["w2"] + p["b2"])
    alpha = jax.nn.softplus(a @ p["wa"] + p["ba"]) + 1.0
    beta = jax.nn.softplus(a @ p["wb"] + p["bb"]) + 1.0
    return alpha, beta


def _reference_bf16(state, p):
    bf = jnp.bfloat16

    def mm(x, w):
        return jnp.dot(x.astype(bf), w.astype(bf),
                       preferred_element_type=jnp.float32)

    a = jnp.tanh(mm(state, p["w1"]) + p["b1"])
    a = jnp.tanh(mm(a, p["w2"]) + p["b2"])
    alpha = jax.nn.softplus(mm(a, p["wa"]) + p["ba"]) + 1.0
    beta = jax.nn.softplus(mm(a, p["wb"]) + p["bb"]) + 1.0
    return alpha, beta


if __name__ == "__main__":
    key = jax.random.PRNGKey(0)
    k_state, k_params = jax.random.split(key)

    batch = 8
    obs_space = 32
    action_space = 8

    state = jax.random.normal(k_state, (batch, obs_space), jnp.float32)
    raw = init_raw_params(k_params, obs_space, action_space)
    packed = pack_params(raw, obs_space, action_space)

    alpha, beta = beta_policy_forward(state, packed)
    alpha = jax.block_until_ready(alpha)
    beta = jax.block_until_ready(beta)

    # sanity checks: precision-matched bf16 reference (tight) and full-f32
    # PyTorch-equivalent reference (loose, since weights are bf16-quantized).
    ref_a_bf, ref_b_bf = _reference_bf16(state, raw)
    ref_a_32, ref_b_32 = _reference_f32(state, raw)

    assert alpha.shape == (batch, action_space)
    assert beta.shape == (batch, action_space)
    assert jnp.allclose(alpha, ref_a_bf, atol=2e-2, rtol=2e-2)
    assert jnp.allclose(beta, ref_b_bf, atol=2e-2, rtol=2e-2)
    assert jnp.allclose(alpha, ref_a_32, atol=5e-2, rtol=5e-2)
    assert jnp.allclose(beta, ref_b_32, atol=5e-2, rtol=5e-2)
    assert bool(jnp.all(alpha > 1.0)) and bool(jnp.all(beta > 1.0))

    print("KERNEL_OK")
</pallas_src>

<mosaic_0001>
module attributes {stable_mosaic.version = 11 : i64} {
  func.func @_beta_policy_kernel(%arg0: i32, %arg1: memref<8x32xf32, #tpu.memory_space<vmem>>, %arg2: memref<288x256xbf16, #tpu.memory_space<vmem>>, %arg3: memref<256x128xbf16, #tpu.memory_space<vmem>>, %arg4: memref<8x256xf32, #tpu.memory_space<vmem>>, %arg5: memref<8x128xf32, #tpu.memory_space<vmem>>) attributes {dimension_semantics = [#tpu.dimension_semantics<parallel>], iteration_bounds = array<i64: 1>, scalar_prefetch = 0 : i64, scratch_operands = 0 : i64, tpu.core_type = #tpu.core_type<tc>, window_params = [{transform_indices = @transform_0, window_bounds = array<i64: 8, 32>}, {pipeline_mode = #tpu.pipeline_mode<synchronous>, transform_indices = @transform_1, window_bounds = array<i64: 288, 256>}, {pipeline_mode = #tpu.pipeline_mode<synchronous>, transform_indices = @transform_2, window_bounds = array<i64: 256, 128>}, {pipeline_mode = #tpu.pipeline_mode<synchronous>, transform_indices = @transform_3, window_bounds = array<i64: 8, 256>}, {transform_indices = @transform_4, window_bounds = array<i64: 8, 128>}]} {
    %c0 = arith.constant 0 : index
    %c0_0 = arith.constant 0 : index
    %0 = vector.load %arg1[%c0, %c0_0] : memref<8x32xf32, #tpu.memory_space<vmem>>, vector<8x32xf32>
    %1 = arith.truncf %0 : vector<8x32xf32> to vector<8x32xbf16>
    %c0_1 = arith.constant 0 : index
    %c0_2 = arith.constant 0 : index
    %2 = vector.load %arg2[%c0_1, %c0_2] : memref<288x256xbf16, #tpu.memory_space<vmem>>, vector<32x256xbf16>
    %cst = arith.constant dense<0.000000e+00> : vector<8x256xf32>
    %3 = tpu.matmul %1, %2, %cst {dimension_numbers = #tpu.dot_dimension_numbers<[1], [0], [0], [1], [0, 0, 1, 1], [], []>} : vector<8x32xbf16>, vector<32x256xbf16>, vector<8x256xf32> -> vector<8x256xf32>
    %c0_3 = arith.constant 0 : index
    %c0_4 = arith.constant 0 : index
    %4 = vector.load %arg4[%c0_3, %c0_4] : memref<8x256xf32, #tpu.memory_space<vmem>>, vector<1x256xf32>
    %5 = vector.broadcast %4 : vector<1x256xf32> to vector<8x256xf32>
    %6 = arith.addf %3, %5 : vector<8x256xf32>
    %7 = math.tanh %6 : vector<8x256xf32>
    %c32 = arith.constant 32 : index
    %c0_5 = arith.constant 0 : index
    %8 = vector.load %arg2[%c32, %c0_5] : memref<288x256xbf16, #tpu.memory_space<vmem>>, vector<256x256xbf16>
    %9 = arith.truncf %7 : vector<8x256xf32> to vector<8x256xbf16>
    %cst_6 = arith.constant dense<0.000000e+00> : vector<8x256xf32>
    %10 = tpu.matmul %9, %8, %cst_6 {dimension_numbers = #tpu.dot_dimension_numbers<[1], [0], [0], [1], [0, 0, 1, 1], [], []>} : vector<8x256xbf16>, vector<256x256xbf16>, vector<8x256xf32> -> vector<8x256xf32>
    %c1 = arith.constant 1 : index
    %c0_7 = arith.constant 0 : index
    %11 = vector.load %arg4[%c1, %c0_7] : memref<8x256xf32, #tpu.memory_space<vmem>>, vector<1x256xf32>
    %12 = vector.broadcast %11 : vector<1x256xf32> to vector<8x256xf32>
    %13 = arith.addf %10, %12 : vector<8x256xf32>
    %14 = math.tanh %13 : vector<8x256xf32>
    %15 = arith.truncf %14 : vector<8x256xf32> to vector<8x256xbf16>
    %c0_8 = arith.constant 0 : index
    %c0_9 = arith.constant 0 : index
    %16 = vector.load %arg3[%c0_8, %c0_9] : memref<256x128xbf16, #tpu.memory_space<vmem>>, vector<256x128xbf16>
    %cst_10 = arith.constant dense<0.000000e+00> : vector<8x128xf32>
    %17 = tpu.matmul %15, %16, %cst_10 {dimension_numbers = #tpu.dot_dimension_numbers<[1], [0], [0], [1], [0, 0, 1, 1], [], []>} : vector<8x256xbf16>, vector<256x128xbf16>, vector<8x128xf32> -> vector<8x128xf32>
    %c2 = arith.constant 2 : index
    %c0_11 = arith.constant 0 : index
    %18 = vector.load %arg4[%c2, %c0_11] : memref<8x256xf32, #tpu.memory_space<vmem>>, vector<1x128xf32>
    %19 = vector.broadcast %18 : vector<1x128xf32> to vector<8x128xf32>
    %20 = arith.addf %17, %19 : vector<8x128xf32>
    %cst_12 = arith.constant 0.000000e+00 : f32
    %21 = vector.broadcast %cst_12 : f32 to vector<8x128xf32>
    %22 = arith.maximumf %20, %21 : vector<8x128xf32>
    %23 = math.absf %20 : vector<8x128xf32>
    %cst_13 = arith.constant 0.000000e+00 : f32
    %24 = vector.broadcast %cst_13 : f32 to vector<8x128xf32>
    %25 = arith.subf %24, %23 : vector<8x128xf32>
    %26 = math.exp %25 : vector<8x128xf32>
    %27 = math.log1p %26 : vector<8x128xf32>
    %28 = arith.addf %22, %27 : vector<8x128xf32>
    %cst_14 = arith.constant 1.000000e+00 : f32
    %29 = vector.broadcast %cst_14 : f32 to vector<8x128xf32>
    %30 = arith.addf %28, %29 : vector<8x128xf32>
    %c0_15 = arith.constant 0 : index
    %c0_16 = arith.constant 0 : index
    %31 = vector.load %arg5[%c0_15, %c0_16] : memref<8x128xf32, #tpu.memory_space<vmem>>, vector<8x128xf32>
    tpu.vector_store %arg5[%c0_15, %c0_16], %30 {strides = array<i32>} : memref<8x128xf32, #tpu.memory_space<vmem>>, vector<8x128xf32>,
    return
  }
  func.func @transform_0(%arg0: i32) -> (i32, i32) {
    %c0_i32 = arith.constant 0 : i32
    %c0_i32_0 = arith.constant 0 : i32
    return %arg0, %c0_i32 : i32, i32
  }
  func.func @transform_1(%arg0: i32) -> (i32, i32) {
    %c0_i32 = arith.constant 0 : i32
    %c0_i32_0 = arith.constant 0 : i32
    %c0_i32_1 = arith.constant 0 : i32
    return %c0_i32, %c0_i32_0 : i32, i32
  }
  func.func @transform_2(%arg0: i32) -> (i32, i32) {
    %c0_i32 = arith.constant 0 : i32
    %c0_i32_0 = arith.constant 0 : i32
    %c0_i32_1 = arith.constant 0 : i32
    return %c0_i32, %c0_i32_0 : i32, i32
  }
  func.func @transform_3(%arg0: i32) -> (i32, i32) {
    %c0_i32 = arith.constant 0 : i32
    %c0_i32_0 = arith.constant 0 : i32
    %c0_i32_1 = arith.constant 0 : i32
    return %c0_i32, %c0_i32_0 : i32, i32
  }
  func.func @transform_4(%arg0: i32) -> (i32, i32) {
    %c0_i32 = arith.constant 0 : i32
    %c0_i32_0 = arith.constant 0 : i32
    return %arg0, %c0_i32 : i32, i32
  }
}

</mosaic_0001>

<bundles_post_ra>
// kernel: tpu_custom_call.1
= control target key start
LH: loop header
LB: loop body
LE: loop exit
PB: predicated region body
PF: predicated region fallthrough
CT: control target
= control target key end

     0   :  { %9 = vsyncpa [#allocation3], 0  ;;  %s1052_s0 = inlined_call_operand.hbm [shape: f32[8,32], index: 0, kind: input, shape index: {}]   ;;  %s1053_s1 = inlined_call_operand.hbm [shape: bf16[288,256], index: 1, kind: input, shape index: {}]   ;;  %s1054_s2 = inlined_call_operand.hbm [shape: bf16[256,128], index: 2, kind: input, shape index: {}]   ;;  %s1055_s3 = inlined_call_operand.hbm [shape: f32[8,256], index: 3, kind: input, shape index: {}]   ;;  %s1056_s4 = inlined_call_operand.hbm [shape: f32[8,128], index: 4, kind: output, shape index: {}]  }
   0x1   :  { %10 = vsyncpa [#allocation6], 0 }
   0x2   :  { %11 = vsyncpa [#allocation9], 0  ;;  %s28_s17 = sshll.u32 %s1053_s1, 4  ;;  %s29_s17 = int_to_ptr.hbm [resolvable:$true] %s28_s17 }
   0x3   :  { %12 = vsyncpa [#allocation4], 0  ;;  %s1001_s18 = smov [#allocation5]   ;;  %s18_s22 = sshll.u32 %s1052_s0, 4  ;;  %s19_s22 = int_to_ptr.hbm [resolvable:$true] %s18_s22 }
   0x4   :  { %s30_s19 = sshll.u32 %s1001_s18, 4  ;;  %s1002_s23 = smov 128   ;;  %s31_s19 = int_to_ptr.vmem [resolvable:$true] %s30_s19 }
   0x5   :  { %s1003_s24 = smov 8   ;;  %s1004_s25 = smov [#allocation2]  }
   0x6   :  { %36 = dma.hbm_to_vmem [thread:$0]  %s29_s17, 4608, %s31_s19, [#allocation6], %s1002_s23, %s1002_s23, %s1003_s24  }
   0x7   :  { %s20_s26 = sshll.u32 %s1004_s25, 4  ;;  %s41_s29 = sshll.u32 %s1054_s2, 4  ;;  %s21_s26 = int_to_ptr.vmem [resolvable:$true] %s20_s26  ;;  %s42_s29 = int_to_ptr.hbm [resolvable:$true] %s41_s29 }
   0x8   :  { %23 = dma.hbm_to_vmem [thread:$0]  %s19_s22, 128, %s21_s26, [#allocation3]  }
   0x9   :  { %s1005_s1 = smov [#allocation7]   ;;  %s55_s0 = sshll.u32 %s1055_s3, 4  ;;  %s56_s0 = int_to_ptr.hbm [resolvable:$true] %s55_s0 }
   0xa   :  { %s43_s30 = sshll.u32 %s1005_s1, 4  ;;  %s1006_s7 = smov 64   ;;  %s44_s30 = int_to_ptr.vmem [resolvable:$true] %s43_s30 }
   0xb   :  { %s1007_s8 = smov 4   ;;  %s1008_s9 = smov [#allocation8]  }
   0xc   :  { %49 = dma.hbm_to_vmem [thread:$0]  %s42_s29, 2048, %s44_s30, [#allocation6], %s1006_s7, %s1006_s7, %s1007_s8  }
   0xd   :  { %s57_s10 = sshll.u32 %s1008_s9, 4  ;;  %s58_s10 = int_to_ptr.vmem [resolvable:$true] %s57_s10 }
   0xe   :  { %60 = dma.hbm_to_vmem [thread:$0]  %s56_s0, 256, %s58_s10, [#allocation9]  }
   0xf   :  { %993 = dma.done.wait [#allocation3], 128  }
  0x10   :  { %994 = vsyncadd [#allocation3], 4294967168 }
  0x11   :  { %995 = dma.done.wait [#allocation6], 6656  }
  0x12   :  { %996 = vsyncadd [#allocation6], 4294960640 }
  0x13   :  { %997 = dma.done.wait [#allocation9], 256  }
  0x14   :  { %998 = vsyncadd [#allocation9], 4294967040  ;;  %v600_v0 = vld [vmem:[#allocation5 + $0x10] sm:$0xf]  ;;  %v803_v1 = vld [vmem:[#allocation5 + $0x14] sm:$0xf0] }
  0x15   :  { %v802_v2 = vld [vmem:[#allocation5 + $0x14] sm:$0xf]  ;;  %v601_v3 = vor.u32 %v803_v1, %v600_v0  ;;  %v602_v4 = vld [vmem:[#allocation5 + $0x18] sm:$0xf0]  ;;  %v592_v5 = vld [vmem:[#allocation5] sm:$0xf] }
  0x16   :  { %v801_v6 = vld [vmem:[#allocation5 + $0x4] sm:$0xf0]  ;;  %v605_v7 = vor.u32 %v802_v2, %v602_v4  ;;  %v800_v8 = vld [vmem:[#allocation5 + $0x4] sm:$0xf]  ;;  %v594_v9 = vld [vmem:[#allocation5 + $0x8] sm:$0xf0] }
  0x17   :  { %v78_v10 = vld [vmem:[#allocation2] sm:$0xff]  ;;  %vm110_vm0 = vcmask 261120   ;;  %120 = vmatpush.bf16.msra.mxu0 %v601_v3  ;;  %v593_v11 = vor.u32 %v801_v6, %v592_v5  ;;  %v666_v12 = vld [vmem:[#allocation5 + $0x90] sm:$0xf]  ;;  %v597_v15 = vor.u32 %v800_v8, %v594_v9  ;;  %v818_v18 = vld [vmem:[#allocation5 + $0x94] sm:$0xf] }
  0x18   :  { %v819_v13 = vld [vmem:[#allocation5 + $0x94] sm:$0xf0]  ;;  %v730_v14 = vld [vmem:[#allocation5 + $0x110] sm:$0xf]  ;;  %133 = vmatpush.bf16.msra.mxu1 %v605_v7  ;;  %v668_v19 = vld [vmem:[#allocation5 + $0x98] sm:$0xf0]  ;;  %v79_v25 = vpack.c.bf16 %v78_v10, %v78_v10 }
  0x19   :  { %v667_v16 = vor.u32 %v819_v13, %v666_v12  ;;  %v835_v17 = vld [vmem:[#allocation5 + $0x114] sm:$0xf0]  ;;  %v671_v21 = vor.u32 %v818_v18, %v668_v19  ;;  %v834_v22 = vld [vmem:[#allocation5 + $0x114] sm:$0xf]  ;;  %v732_v23 = vld [vmem:[#allocation5 + $0x118] sm:$0xf0] }
  0x1a   :  { %v731_v20 = vor.u32 %v835_v17, %v730_v14  ;;  %v658_v24 = vld [vmem:[#allocation5 + $0x80] sm:$0xf]  ;;  %v735_v26 = vor.u32 %v834_v22, %v732_v23  ;;  %v817_v27 = vld [vmem:[#allocation5 + $0x84] sm:$0xf0]  ;;  %v816_v32 = vld [vmem:[#allocation5 + $0x84] sm:$0xf] }
  0x1b   :  { %343 = vmatpush.bf16.msra.mxu2 %v667_v16  ;;  %v722_v28 = vld [vmem:[#allocation5 + $0x100] sm:$0xf]  ;;  %v833_v29 = vld [vmem:[#allocation5 + $0x104] sm:$0xf0]  ;;  %121 = vmatpush.bf16.msra.mxu0 %v593_v11  ;;  %v659_v30 = vor.u32 %v817_v27, %v658_v24  ;;  %v660_v33 = vld [vmem:[#allocation5 + $0x88] sm:$0xf0] }
  0x1c   :  { %356 = vmatpush.bf16.msra.mxu3 %v731_v20  ;;  %v723_v31 = vor.u32 %v833_v29, %v722_v28  ;;  %v832_v34 = vld [vmem:[#allocation5 + $0x104] sm:$0xf]  ;;  %134 = vmatpush.bf16.msra.mxu1 %v597_v15  ;;  %v663_v35 = vor.u32 %v816_v32, %v660_v33  ;;  %v724_v36 = vld [vmem:[#allocation5 + $0x108] sm:$0xf0]  ;;  %v650_v37 = vld [vmem:[#allocation5 + $0x70] sm:$0xf] }
  0x1d   :  { %v815_v38 = vld [vmem:[#allocation5 + $0x74] sm:$0xf0]  ;;  %v727_v39 = vor.u32 %v832_v34, %v724_v36  ;;  %v714_v40 = vld [vmem:[#allocation5 + $0xf0] sm:$0xf]  ;;  %v814_v42 = vld [vmem:[#allocation5 + $0x74] sm:$0xf] }
  0x1e   :  { %v831_v41 = vld [vmem:[#allocation5 + $0xf4] sm:$0xf0]  ;;  %606 = vmatmul.msk.bf16.vlgmr.msra.gmra.mxu0 %vm110_vm0, %v79_v25  ;;  %v651_v43 = vor.u32 %v815_v38, %v650_v37  ;;  %v652_v44 = vld [vmem:[#allocation5 + $0x78] sm:$0xf0]  ;;  %v830_v45 = vld [vmem:[#allocation5 + $0xf4] sm:$0xf] }
  0x1f   :  { %369 = vmatpush.bf16.msrb.mxu0 %v671_v21  ;;  %344 = vmatpush.bf16.msra.mxu2 %v659_v30  ;;  %v716_v46 = vld [vmem:[#allocation5 + $0xf8] sm:$0xf0]  ;;  %v715_v47 = vor.u32 %v831_v41, %v714_v40  ;;  %v642_v48 = vld [vmem:[#allocation5 + $0x60] sm:$0xf]  ;;  %v813_v49 = vld [vmem:[#allocation5 + $0x64] sm:$0xf0]  ;;  %v655_v50 = vor.u32 %v814_v42, %v652_v44 }
  0x20   :  { %382 = vmatpush.bf16.msrb.mxu1 %v735_v26  ;;  %357 = vmatpush.bf16.msra.mxu3 %v723_v31  ;;  %v706_v51 = vld [vmem:[#allocation5 + $0xe0] sm:$0xf]  ;;  %v829_v52 = vld [vmem:[#allocation5 + $0xe4] sm:$0xf0]  ;;  %v719_v53 = vor.u32 %v830_v45, %v716_v46  ;;  %v812_v54 = vld [vmem:[#allocation5 + $0x64] sm:$0xf]  ;;  %v643_v56 = vor.u32 %v813_v49, %v642_v48 }
  0x21   :  { %607 = vmatmul.msk.bf16.vlgmr.msra.gmra.mxu1 %vm110_vm0, %v79_v25  ;;  %v644_v55 = vld [vmem:[#allocation5 + $0x68] sm:$0xf0]  ;;  %v828_v57 = vld [vmem:[#allocation5 + $0xe4] sm:$0xf]  ;;  %v707_v59 = vor.u32 %v829_v52, %v706_v51  ;;  %v634_v60 = vld [vmem:[#allocation5 + $0x50] sm:$0xf] }
  0x22   :  { %v708_v58 = vld [vmem:[#allocation5 + $0xe8] sm:$0xf0]  ;;  %v811_v61 = vld [vmem:[#allocation5 + $0x54] sm:$0xf0]  ;;  %v647_v62 = vor.u32 %v812_v54, %v644_v55  ;;  %v698_v63 = vld [vmem:[#allocation5 + $0xd0] sm:$0xf] }
  0x23   :  { %370 = vmatpush.bf16.msrb.mxu0 %v663_v35  ;;  %345 = vmatpush.bf16.msra.mxu2 %v651_v43  ;;  %v827_v0 = vld [vmem:[#allocation5 + $0xd4] sm:$0xf0]  ;;  %v711_v1 = vor.u32 %v828_v57, %v708_v58  ;;  %v810_v2 = vld [vmem:[#allocation5 + $0x54] sm:$0xf]  ;;  %v636_v3 = vld [vmem:[#allocation5 + $0x58] sm:$0xf0]  ;;  %v635_v4 = vor.u32 %v811_v61, %v634_v60 }
  0x24   :  { %383 = vmatpush.bf16.msrb.mxu1 %v727_v39  ;;  %358 = vmatpush.bf16.msra.mxu3 %v715_v47  ;;  %v826_v5 = vld [vmem:[#allocation5 + $0xd4] sm:$0xf]  ;;  %v700_v6 = vld [vmem:[#allocation5 + $0xd8] sm:$0xf0]  ;;  %v699_v7 = vor.u32 %v827_v0, %v698_v63  ;;  %v639_v8 = vor.u32 %v810_v2, %v636_v3  ;;  %v626_v10 = vld [vmem:[#allocation5 + $0x40] sm:$0xf] }
  0x25   :  { %v703_v9 = vor.u32 %v826_v5, %v700_v6  ;;  %v809_v11 = vld [vmem:[#allocation5 + $0x44] sm:$0xf0]  ;;  %v690_v12 = vld [vmem:[#allocation5 + $0xc0] sm:$0xf]  ;;  %v808_v15 = vld [vmem:[#allocation5 + $0x44] sm:$0xf] }
  0x26   :  { %v627_v13 = vor.u32 %v809_v11, %v626_v10  ;;  %v825_v14 = vld [vmem:[#allocation5 + $0xc4] sm:$0xf0]  ;;  %v628_v17 = vld [vmem:[#allocation5 + $0x48] sm:$0xf0]  ;;  %v824_v18 = vld [vmem:[#allocation5 + $0xc4] sm:$0xf] }
  0x27   :  { %371 = vmatpush.bf16.msrb.mxu0 %v655_v50  ;;  %346 = vmatpush.bf16.msra.mxu2 %v643_v56  ;;  %v691_v16 = vor.u32 %v825_v14, %v690_v12  ;;  %v692_v19 = vld [vmem:[#allocation5 + $0xc8] sm:$0xf0]  ;;  %v631_v20 = vor.u32 %v808_v15, %v628_v17  ;;  %v618_v22 = vld [vmem:[#allocation5 + $0x30] sm:$0xf]  ;;  %v807_v23 = vld [vmem:[#allocation5 + $0x34] sm:$0xf0] }
  0x28   :  { %384 = vmatpush.bf16.msrb.mxu1 %v719_v53  ;;  %359 = vmatpush.bf16.msra.mxu3 %v707_v59  ;;  %v695_v21 = vor.u32 %v824_v18, %v692_v19  ;;  %v682_v24 = vld [vmem:[#allocation5 + $0xb0] sm:$0xf]  ;;  %v619_v25 = vor.u32 %v807_v23, %v618_v22  ;;  %v823_v26 = vld [vmem:[#allocation5 + $0xb4] sm:$0xf0]  ;;  %v806_v27 = vld [vmem:[#allocation5 + $0x34] sm:$0xf] }
  0x29   :  { %v620_v28 = vld [vmem:[#allocation5 + $0x38] sm:$0xf0]  ;;  %v683_v29 = vor.u32 %v823_v26, %v682_v24  ;;  %v822_v31 = vld [vmem:[#allocation5 + $0xb4] sm:$0xf]  ;;  %v610_v34 = vld [vmem:[#allocation5 + $0x20] sm:$0xf] }
  0x2a   :  { %v623_v30 = vor.u32 %v806_v27, %v620_v28  ;;  %v684_v32 = vld [vmem:[#allocation5 + $0xb8] sm:$0xf0]  ;;  %v805_v35 = vld [vmem:[#allocation5 + $0x24] sm:$0xf0]  ;;  %v674_v36 = vld [vmem:[#allocation5 + $0xa0] sm:$0xf] }
  0x2b   :  { %372 = vmatpush.bf16.msrb.mxu0 %v647_v62  ;;  %347 = vmatpush.bf16.msra.mxu2 %v635_v4  ;;  %v687_v33 = vor.u32 %v822_v31, %v684_v32  ;;  %v611_v37 = vor.u32 %v805_v35, %v610_v34  ;;  %v821_v38 = vld [vmem:[#allocation5 + $0xa4] sm:$0xf0]  ;;  %v804_v39 = vld [vmem:[#allocation5 + $0x24] sm:$0xf]  ;;  %v612_v40 = vld [vmem:[#allocation5 + $0x28] sm:$0xf0] }
  0x2c   :  { %385 = vmatpush.bf16.msrb.mxu1 %v711_v1  ;;  %360 = vmatpush.bf16.msra.mxu3 %v699_v7  ;;  %v675_v41 = vor.u32 %v821_v38, %v674_v36  ;;  %v615_v42 = vor.u32 %v804_v39, %v612_v40  ;;  %v820_v43 = vld [vmem:[#allocation5 + $0xa4] sm:$0xf]  ;;  %v676_v44 = vld [vmem:[#allocation5 + $0xa8] sm:$0xf0]  ;;  %v851_v46 = vld [vmem:[#allocation7 + $0x78] sm:$0xff]  ;;  %s1009_s2 = smov [#allocation10]  }
  0x2d   :  { %v679_v45 = vor.u32 %v820_v43, %v676_v44  ;;  %v843_v47 = vld [vmem:[#allocation7 + $0x38] sm:$0xff]  ;;  %v850_v48 = vld [vmem:[#allocation7 + $0x70] sm:$0xff]  ;;  %v849_v50 = vld [vmem:[#allocation7 + $0x68] sm:$0xff]  ;;  %s576_s3 = sshll.u32 %s1009_s2, 4  ;;  %s578_s13 = sshll.u32 %s1056_s4, 4  ;;  %s577_s3 = int_to_ptr.vmem [resolvable:$true] %s576_s3  ;;  %s579_s13 = int_to_ptr.hbm [resolvable:$true] %s578_s13 }
  0x2e   :  { %v842_v49 = vld [vmem:[#allocation7 + $0x30] sm:$0xff]  ;;  %v841_v51 = vld [vmem:[#allocation7 + $0x28] sm:$0xff]  ;;  %v848_v52 = vld [vmem:[#allocation7 + $0x60] sm:$0xff] }
  0x2f   :  { %373 = vmatpush.bf16.msrb.mxu0 %v639_v8  ;;  %348 = vmatpush.bf16.msra.mxu2 %v627_v13  ;;  %v84_v53 = vld [vmem:[#allocation8] ss:$8 sm:$0x3]  ;;  %v847_v54 = vld [vmem:[#allocation7 + $0x58] sm:$0xff]  ;;  %v846_v4 = vld [vmem:[#allocation7 + $0x50] sm:$0xff] }
  0x30   :  { %386 = vmatpush.bf16.msrb.mxu1 %v703_v9  ;;  %361 = vmatpush.bf16.msra.mxu3 %v691_v16  ;;  %v86_v55 = vperm.slane %v84_v53, 0  ;;  %v87_v56 = vperm.slane %v84_v53, 1  ;;  %v840_v3 = vld [vmem:[#allocation7 + $0x20] sm:$0xff]  ;;  %v839_v5 = vld [vmem:[#allocation7 + $0x18] sm:$0xff]  ;;  %v845_v6 = vld [vmem:[#allocation7 + $0x48] sm:$0xff] }
  0x31   :  { %v838_v7 = vld [vmem:[#allocation7 + $0x10] sm:$0xff]  ;;  %v844_v8 = vld [vmem:[#allocation7 + $0x40] sm:$0xff]  ;;  %v837_v9 = vld [vmem:[#allocation7 + $0x8] sm:$0xff] }
  0x32   :  { %v836_v10 = vld [vmem:[#allocation7] sm:$0xff] }
  0x33   :  { %374 = vmatpush.bf16.msrb.mxu0 %v631_v20  ;;  %349 = vmatpush.bf16.msra.mxu2 %v619_v25  ;;  %v177_v11 = vld [vmem:[#allocation8 + $0x1] ss:$8 sm:$0x3]  ;;  %v431_v31 = vld [vmem:[#allocation8 + $0x2] ss:$0 sm:$0xff] }
  0x34   :  { %387 = vmatpush.bf16.msrb.mxu1 %v695_v21  ;;  %362 = vmatpush.bf16.msra.mxu3 %v683_v29  ;;  %v180_v12 = vperm.slane %v177_v11, 1  ;;  %v179_v17 = vperm.slane %v177_v11, 0 }
  0x37   :  { %375 = vmatpush.bf16.msrb.mxu0 %v623_v30  ;;  %350 = vmatpush.bf16.msra.mxu2 %v611_v37 }
  0x38   :  { %388 = vmatpush.bf16.msrb.mxu1 %v687_v33  ;;  %363 = vmatpush.bf16.msra.mxu3 %v675_v41 }
  0x3b   :  { %376 = vmatpush.bf16.msrb.mxu0 %v615_v42  ;;  %528 = vmatpush.bf16.msrb.mxu2 %v843_v47 }
  0x3c   :  { %389 = vmatpush.bf16.msrb.mxu1 %v679_v45  ;;  %541 = vmatpush.bf16.msrb.mxu3 %v851_v46 }
  0x3f   :  { %529 = vmatpush.bf16.msrb.mxu2 %v842_v49 }
  0x40   :  { %542 = vmatpush.bf16.msrb.mxu3 %v850_v48 }
  0x43   :  { %530 = vmatpush.bf16.msrb.mxu2 %v841_v51 }
  0x44   :  { %543 = vmatpush.bf16.msrb.mxu3 %v849_v50 }
  0x47   :  { %531 = vmatpush.bf16.msrb.mxu2 %v840_v3 }
  0x48   :  { %544 = vmatpush.bf16.msrb.mxu3 %v848_v52 }
  0x4b   :  { %532 = vmatpush.bf16.msrb.mxu2 %v839_v5 }
  0x4c   :  { %545 = vmatpush.bf16.msrb.mxu3 %v847_v54 }
  0x4f   :  { %533 = vmatpush.bf16.msrb.mxu2 %v838_v7 }
  0x50   :  { %546 = vmatpush.bf16.msrb.mxu3 %v846_v4 }
  0x53   :  { %534 = vmatpush.bf16.msrb.mxu2 %v837_v9 }
  0x54   :  { %547 = vmatpush.bf16.msrb.mxu3 %v845_v6 }
  0x57   :  { %535 = vmatpush.bf16.msrb.mxu2 %v836_v10 }
  0x58   :  { %548 = vmatpush.bf16.msrb.mxu3 %v844_v8 }
  0x9b   :  { %v123_v57 = vpop.f32.mrf.mxu0 }
  0x9c   :  { %v124_v58 = vadd.f32 %v123_v57, %v86_v55 }
  0x9e   :  { %v136_v59 = vpop.f32.mrf.mxu1  ;;  %861 = vtanh.f32 %v124_v58 }
  0x9f   :  { %v137_v60 = vadd.f32 %v136_v59, %v87_v56 }
  0xa1   :  { %863 = vtanh.f32 %v137_v60 }
  0xa3   :  { %v125_v61 = vpop.f32.mrf.mxu0 }
  0xa4   :  { %v862_v62 = vpop.eup %861 }
  0xa5   :  { %v174_v1 = vpack.c.bf16 %v862_v62, %v862_v62 }
  0xa6   :  { %v138_v63 = vpop.f32.mrf.mxu1 }
  0xa7   :  { %v864_v0 = vpop.eup %863  ;;  %351 = vmatmul.bf16.vlgmr.msra.gmra.mxu2 %v174_v1  ;;  %377 = vmatmul.bf16.vlgmr.msrb.gmra.mxu0 %v174_v1 }
  0xa8   :  { %v175_v2 = vpack.c.bf16 %v864_v0, %v864_v0 }
  0xaa   :  { %364 = vmatmul.bf16.vlgmr.msra.gmra.mxu3 %v175_v2  ;;  %390 = vmatmul.bf16.vlgmr.msrb.gmra.mxu1 %v175_v2 }
 0x124   :  { %v378_v13 = vpop.f32.mrf.mxu0 }
 0x125   :  { %v379_v14 = vadd.f32 %v378_v13, %v180_v12 }
 0x127   :  { %v391_v15 = vpop.f32.mrf.mxu1 }
 0x128   :  { %v392_v16 = vadd.f32 %v391_v15, %v379_v14 }
 0x12a   :  { %865 = vtanh.f32 %v392_v16  ;;  %v352_v18 = vpop.f32.mrf.mxu2 }
 0x12b   :  { %v353_v19 = vadd.f32 %v352_v18, %v179_v17 }
 0x12c   :  { %v380_v21 = vpop.f32.mrf.mxu0 }
 0x12d   :  { %v365_v20 = vpop.f32.mrf.mxu3 }
 0x12e   :  { %v366_v22 = vadd.f32 %v365_v20, %v353_v19 }
 0x12f   :  { %v393_v23 = vpop.f32.mrf.mxu1 }
 0x130   :  { %v866_v24 = vpop.eup %865  ;;  %867 = vtanh.f32 %v366_v22 }
 0x131   :  { %v398_v25 = vpack.c.bf16 %v866_v24, %v866_v24 }
 0x132   :  { %v354_v26 = vpop.f32.mrf.mxu2 }
 0x133   :  { %549 = vmatmul.bf16.vlgmr.msrb.gmra.mxu3 %v398_v25 }
 0x135   :  { %v367_v27 = vpop.f32.mrf.mxu3 }
 0x136   :  { %v868_v28 = vpop.eup %867 }
 0x137   :  { %v397_v29 = vpack.c.bf16 %v868_v28, %v868_v28 }
 0x139   :  { %536 = vmatmul.bf16.vlgmr.msrb.gmra.mxu2 %v397_v29 }
 0x1b6   :  { %v550_v30 = vpop.f32.mrf.mxu3 }
 0x1bc   :  { %v537_v32 = vpop.f32.mrf.mxu2 }
 0x1bd   :  { %v538_v33 = vadd.f32 %v537_v32, %v431_v31 }
 0x1be   :  { %v552_v34 = vpop.f32.mrf.mxu3 }
 0x1bf   :  { %v551_v35 = vadd.f32 %v550_v30, %v538_v33 }
 0x1c1   :  { %v555_v36 = vand.u32 2147483647, %v551_v35  ;;  %v554_v48 = vmax.f32 %v551_v35, 0.0 }
 0x1c3   :  { %v556_v37 = vsub.f32 0.0, %v555_v36 }
 0x1c4   :  { %v539_v38 = vpop.f32.mrf.mxu2 }
 0x1c5   :  { %v557_v39 = vmul.f32 1.442695, %v556_v37 }
 0x1c7   :  { %869 = vpow2.f32 %v557_v39 }
 0x1cd   :  { %v870_v40 = vpop.eup %869 }
 0x1ce   :  { %v559_v41 = vadd.f32 1.0, %v870_v40  ;;  %v562_v42 = vmul.f32 -0.5, %v870_v40  ;;  %v565_v44 = vand.u32 2147483647, %v870_v40 }
 0x1d0   :  { %871 = vlog2.f32 %v559_v41  ;;  %v563_v43 = vadd.f32 1.0, %v562_v42  ;;  %vm566_vm1 = vcmp.lt.f32.partialorder %v565_v44, 0.0004427343 }
 0x1d2   :  { %v564_v47 = vmul.f32 %v870_v40, %v563_v43 }
 0x1d6   :  { %v872_v45 = vpop.eup %871 }
 0x1d7   :  { %v561_v46 = vmul.f32 0.6931472, %v872_v45 }
 0x1d9   :  { %v567_v49 = vsel %vm566_vm1, %v564_v47, %v561_v46 }
 0x1da   :  { %v568_v50 = vadd.f32 %v567_v49, %v554_v48 }
 0x1dc   :  { %v569_v51 = vadd.f32 1.0, %v568_v50 }
 0x1de   :  { %570 = vst [vmem:[#allocation10] sm:$0xff] %v569_v51 }
 0x1df   :  { %581 = dma.vmem_to_hbm [thread:$0]  %s577_s3, 128, %s579_s13, [#allocation4]  }
 0x1e0   :  { %999 = dma.done.wait [#allocation4], 128  }
 0x1e1   :  { %1000 = vsyncadd [#allocation4], 4294967168 }
 0x1e2   :  { %586 = vsyncpa [#allocation3], 1 }
 0x1e3   :  { %587 = vsyncpa [#allocation6], 1 }
 0x1e4   :  { %588 = vsyncpa [#allocation9], 1 }
 0x1e5   :  { %589 = vsyncpa [#allocation4], 1 }

</bundles_post_ra>
